<compile_context>
chip_gen: v7x
topology: tpu7x:2x2x1
jax: 0.10.0
libtpu: 0.0.40
codegen_flags: <defaults>
</compile_context>

<pallas_src>
import functools

import jax
import jax.numpy as jnp
from jax.experimental import pallas as pl
from jax.experimental.pallas import tpu as pltpu

LANE = 128      # padded feature width (full lane dimension)
SUBLANE = 8     # batch / vector rows padded to a multiple of this
LN_EPS = 1e-5   # PyTorch nn.LayerNorm default eps


# ----------------------------------------------------------------------------
# Fused whole-model kernel (single invocation, everything resident in VMEM)
# ----------------------------------------------------------------------------
def _mlp_kernel(x_ref, w_ref, vec_ref, o_ref, *, layer_specs):
    """x_ref: (B_pad, LANE) f32, w_ref: (L, LANE, LANE) bf16,
    vec_ref: (N_vec, LANE) f32, o_ref: (B_pad, LANE) f32.

    layer_specs: static tuple per layer of
      (use_ln, use_relu, d_out_real, b_row, gamma_row, beta_row).
    All feature dims are zero-padded to LANE lanes; padded lanes stay exactly
    zero through every layer (zero-padded W columns, b, gamma, beta), so the
    LayerNorm lane sums need no mask.
    """
    h = x_ref[...]  # f32 carry
    for li, (use_ln, use_relu, d_out, b_row, g_row, bt_row) in enumerate(
            layer_specs):
        w = w_ref[li]                             # (LANE, LANE) bf16, static
        b = vec_ref[b_row:b_row + 1, :]           # (1, LANE) f32, static slice
        y = jnp.dot(h.astype(jnp.bfloat16), w,
                    preferred_element_type=jnp.float32) + b

        if use_ln:
            gamma = vec_ref[g_row:g_row + 1, :]
            beta = vec_ref[bt_row:bt_row + 1, :]
            inv_n = 1.0 / float(d_out)
            # One-pass statistics: the two reductions are independent, so the
            # XLU pushes overlap; padded lanes contribute exactly 0 to both.
            s1 = jnp.sum(y, axis=-1, keepdims=True)
            s2 = jnp.sum(y * y, axis=-1, keepdims=True)
            mean = s1 * inv_n
            var = s2 * inv_n - mean * mean
            y = (y - mean) * jax.lax.rsqrt(var + LN_EPS)
            # gamma/beta are zero on padded lanes -> padding returns to 0.
            y = y * gamma + beta

        if use_relu:
            y = jnp.maximum(y, 0.0)

        h = y

    o_ref[...] = h.astype(o_ref.dtype)


# ----------------------------------------------------------------------------
# Parameter construction (deterministic, synthetic)
# ----------------------------------------------------------------------------
def _linear_init(key, d_in, d_out):
    kw, kb = jax.random.split(key)
    scale = 1.0 / jnp.sqrt(jnp.float32(d_in))
    w = jax.random.uniform(kw, (d_in, d_out), jnp.float32, -scale, scale)
    b = jax.random.uniform(kb, (d_out,), jnp.float32, -scale, scale)
    return w, b


def _ulayerset_layers(key, in_dim, hidden_dims, out_dim):
    """[Linear+LN+ReLU] per hidden dim, then plain Linear to out_dim."""
    dims = [in_dim] + list(hidden_dims) + [out_dim]
    n = len(dims) - 1
    keys = jax.random.split(key, n)
    layers = []
    for i in range(n):
        w, b = _linear_init(keys[i], dims[i], dims[i + 1])
        is_hidden = i < n - 1
        layers.append(dict(w=w, b=b, use_ln=is_hidden, use_relu=is_hidden))
    return layers


def _fold_affine(first, second):
    """Fold two consecutive affine layers (no nonlinearity between them):
    z = (x @ Wa + ba) @ Wb + bb = x @ (Wa Wb) + (ba Wb + bb)."""
    w = first["w"] @ second["w"]
    b = first["b"] @ second["w"] + second["b"]
    return dict(w=w, b=b, use_ln=second["use_ln"], use_relu=second["use_relu"])


def make_unet_discriminator_params(key, data_dim, latent_dim, hidden_dims):
    k_enc, k_dec, k_proj = jax.random.split(key, 3)
    last_layer_dim = hidden_dims[0]  # hidden_dims[0] > 0 in our config

    enc = _ulayerset_layers(k_enc, data_dim, hidden_dims, latent_dim)
    dec = _ulayerset_layers(k_dec, latent_dim, list(hidden_dims)[::-1],
                            last_layer_dim)
    pw, pb = _linear_init(k_proj, last_layer_dim, data_dim)
    proj = dict(w=pw, b=pb, use_ln=False, use_relu=False)

    # Unfolded f32 layer list: kept only as the correctness reference.
    ref_layers = enc + dec + [proj]

    # Fold encoder-last(plain) into decoder-first and decoder-last(plain)
    # into project: 7 -> 5 matmuls, mathematically exact.
    folded = (enc[:-1] + [_fold_affine(enc[-1], dec[0])]
              + dec[1:-1] + [_fold_affine(dec[-1], proj)])

    # Pack: one stacked bf16 weight tensor + one stacked f32 vector tensor.
    n_layers = len(folded)
    weights = jnp.zeros((n_layers, LANE, LANE), jnp.float32)
    vec_rows = []
    specs = []
    for li, layer in enumerate(folded):
        d_in, d_out = layer["w"].shape
        weights = weights.at[li, :d_in, :d_out].set(layer["w"])
        b_row = len(vec_rows)
        vec_rows.append(jnp.zeros((LANE,), jnp.float32)
                        .at[:d_out].set(layer["b"]))
        g_row = bt_row = -1
        if layer["use_ln"]:
            g_row = len(vec_rows)
            vec_rows.append(jnp.zeros((LANE,), jnp.float32)
                            .at[:d_out].set(1.0))          # gamma
            bt_row = len(vec_rows)
            vec_rows.append(jnp.zeros((LANE,), jnp.float32))  # beta
        specs.append((bool(layer["use_ln"]), bool(layer["use_relu"]),
                      int(d_out), b_row, g_row, bt_row))

    n_vec = len(vec_rows)
    n_vec_pad = ((n_vec + SUBLANE - 1) // SUBLANE) * SUBLANE
    vec_rows += [jnp.zeros((LANE,), jnp.float32)] * (n_vec_pad - n_vec)
    vectors = jnp.stack(vec_rows)

    return {
        "weights": weights.astype(jnp.bfloat16),   # (L, 128, 128) bf16
        "vectors": vectors,                        # (N_vec_pad, 128) f32
        "layer_specs": tuple(specs),               # static, hashable
        "ref_layers": ref_layers,                  # f32 reference (unfolded)
    }


# ----------------------------------------------------------------------------
# Forward pass: jit(pad -> single pallas_call -> slice)
# ----------------------------------------------------------------------------
@functools.partial(jax.jit, static_argnames=("layer_specs",))
def _forward_impl(weights, vectors, inputs, *, layer_specs):
    B, d_in = inputs.shape
    b_pad = ((B + SUBLANE - 1) // SUBLANE) * SUBLANE
    x = jnp.zeros((b_pad, LANE), jnp.float32).at[:B, :d_in].set(inputs)

    kernel = functools.partial(_mlp_kernel, layer_specs=layer_specs)
    vmem = pl.BlockSpec(memory_space=pltpu.MemorySpace.VMEM)

    out = pl.pallas_call(
        kernel,
        out_shape=jax.ShapeDtypeStruct((b_pad, LANE), jnp.float32),
        in_specs=[vmem, vmem, vmem],
        out_specs=vmem,
    )(x, weights, vectors)

    d_out = layer_specs[-1][2]
    return out[:B, :d_out]


def unet_discriminator_forward(params, inputs):
    return _forward_impl(params["weights"], params["vectors"], inputs,
                         layer_specs=params["layer_specs"])


# ----------------------------------------------------------------------------
# Pure-JAX reference (unfolded, f32, two-pass LN) for correctness checking
# ----------------------------------------------------------------------------
def _reference_forward(ref_layers, inputs):
    h = inputs
    for layer in ref_layers:
        y = h @ layer["w"] + layer["b"]
        if layer["use_ln"]:
            mean = jnp.mean(y, axis=-1, keepdims=True)
            var = jnp.mean((y - mean) ** 2, axis=-1, keepdims=True)
            y = (y - mean) / jnp.sqrt(var + LN_EPS)   # gamma=1, beta=0
        if layer["use_relu"]:
            y = jnp.maximum(y, 0.0)
        h = y
    return h


# ----------------------------------------------------------------------------
if __name__ == "__main__":
    data_dim = 16
    latent_dim = 8
    hidden_dims = [32, 24]
    batch = 8

    key = jax.random.PRNGKey(0)
    k_params, k_data = jax.random.split(key)

    params = make_unet_discriminator_params(k_params, data_dim, latent_dim,
                                            hidden_dims)
    inputs = jax.random.normal(k_data, (batch, data_dim), jnp.float32)

    out = unet_discriminator_forward(params, inputs)
    out = jax.block_until_ready(out)

    assert out.shape == (batch, data_dim), out.shape
    assert out.dtype == jnp.float32
    assert bool(jnp.all(jnp.isfinite(out)))

    # bf16 MXU operands + one-pass LN variance -> loose tolerance vs f32 ref.
    ref = _reference_forward(params["ref_layers"], inputs)
    max_err = float(jnp.max(jnp.abs(out - ref)))
    assert max_err < 1e-1, f"max abs error vs reference: {max_err}"

    print("KERNEL_OK")
</pallas_src>

<mosaic_0001>
module attributes {stable_mosaic.version = 11 : i64} {
  func.func @_mlp_kernel(%arg0: memref<8x128xf32, #tpu.memory_space<vmem>>, %arg1: memref<5x128x128xbf16, #tpu.memory_space<vmem>>, %arg2: memref<16x128xf32, #tpu.memory_space<vmem>>, %arg3: memref<8x128xf32, #tpu.memory_space<vmem>>) attributes {dimension_semantics = [], scalar_prefetch = 0 : i64, scratch_operands = 0 : i64, tpu.core_type = #tpu.core_type<tc>} {
    %c0 = arith.constant 0 : index
    %c0_0 = arith.constant 0 : index
    %0 = vector.load %arg0[%c0, %c0_0] : memref<8x128xf32, #tpu.memory_space<vmem>>, vector<8x128xf32>
    %c0_1 = arith.constant 0 : index
    %c0_2 = arith.constant 0 : index
    %c0_3 = arith.constant 0 : index
    %1 = vector.load %arg1[%c0_1, %c0_2, %c0_3] : memref<5x128x128xbf16, #tpu.memory_space<vmem>>, vector<1x128x128xbf16>
    %2 = vector.shape_cast %1 : vector<1x128x128xbf16> to vector<128x128xbf16>
    %c0_4 = arith.constant 0 : index
    %c0_5 = arith.constant 0 : index
    %3 = vector.load %arg2[%c0_4, %c0_5] : memref<16x128xf32, #tpu.memory_space<vmem>>, vector<1x128xf32>
    %4 = arith.truncf %0 : vector<8x128xf32> to vector<8x128xbf16>
    %cst = arith.constant dense<0.000000e+00> : vector<8x128xf32>
    %5 = tpu.matmul %4, %2, %cst {dimension_numbers = #tpu.dot_dimension_numbers<[1], [0], [0], [1], [0, 0, 1, 1], [], []>} : vector<8x128xbf16>, vector<128x128xbf16>, vector<8x128xf32> -> vector<8x128xf32>
    %6 = vector.broadcast %3 : vector<1x128xf32> to vector<8x128xf32>
    %7 = arith.addf %5, %6 : vector<8x128xf32>
    %c1 = arith.constant 1 : index
    %c0_6 = arith.constant 0 : index
    %8 = vector.load %arg2[%c1, %c0_6] : memref<16x128xf32, #tpu.memory_space<vmem>>, vector<1x128xf32>
    %c2 = arith.constant 2 : index
    %c0_7 = arith.constant 0 : index
    %9 = vector.load %arg2[%c2, %c0_7] : memref<16x128xf32, #tpu.memory_space<vmem>>, vector<1x128xf32>
    %cst_8 = arith.constant dense<0.000000e+00> : vector<8xf32>
    %10 = vector.multi_reduction <add>, %7, %cst_8 [1] : vector<8x128xf32> to vector<8xf32>
    %11 = vector.shape_cast %10 : vector<8xf32> to vector<8x1xf32>
    %12 = arith.mulf %7, %7 : vector<8x128xf32>
    %cst_9 = arith.constant dense<0.000000e+00> : vector<8xf32>
    %13 = vector.multi_reduction <add>, %12, %cst_9 [1] : vector<8x128xf32> to vector<8xf32>
    %14 = vector.shape_cast %13 : vector<8xf32> to vector<8x1xf32>
    %cst_10 = arith.constant 3.125000e-02 : f32
    %15 = vector.broadcast %cst_10 : f32 to vector<8x1xf32>
    %16 = arith.mulf %11, %15 : vector<8x1xf32>
    %cst_11 = arith.constant 3.125000e-02 : f32
    %17 = vector.broadcast %cst_11 : f32 to vector<8x1xf32>
    %18 = arith.mulf %14, %17 : vector<8x1xf32>
    %19 = arith.mulf %16, %16 : vector<8x1xf32>
    %20 = arith.subf %18, %19 : vector<8x1xf32>
    %21 = vector.broadcast %16 : vector<8x1xf32> to vector<8x128xf32>
    %22 = arith.subf %7, %21 : vector<8x128xf32>
    %cst_12 = arith.constant 9.99999974E-6 : f32
    %23 = vector.broadcast %cst_12 : f32 to vector<8x1xf32>
    %24 = arith.addf %20, %23 : vector<8x1xf32>
    %25 = math.rsqrt %24 : vector<8x1xf32>
    %26 = vector.broadcast %25 : vector<8x1xf32> to vector<8x128xf32>
    %27 = arith.mulf %22, %26 : vector<8x128xf32>
    %28 = vector.broadcast %8 : vector<1x128xf32> to vector<8x128xf32>
    %29 = arith.mulf %27, %28 : vector<8x128xf32>
    %30 = vector.broadcast %9 : vector<1x128xf32> to vector<8x128xf32>
    %31 = arith.addf %29, %30 : vector<8x128xf32>
    %cst_13 = arith.constant 0.000000e+00 : f32
    %32 = vector.broadcast %cst_13 : f32 to vector<8x128xf32>
    %33 = arith.maximumf %31, %32 : vector<8x128xf32>
    %c1_14 = arith.constant 1 : index
    %c0_15 = arith.constant 0 : index
    %c0_16 = arith.constant 0 : index
    %34 = vector.load %arg1[%c1_14, %c0_15, %c0_16] : memref<5x128x128xbf16, #tpu.memory_space<vmem>>, vector<1x128x128xbf16>
    %35 = vector.shape_cast %34 : vector<1x128x128xbf16> to vector<128x128xbf16>
    %c3 = arith.constant 3 : index
    %c0_17 = arith.constant 0 : index
    %36 = vector.load %arg2[%c3, %c0_17] : memref<16x128xf32, #tpu.memory_space<vmem>>, vector<1x128xf32>
    %37 = arith.truncf %33 : vector<8x128xf32> to vector<8x128xbf16>
    %cst_18 = arith.constant dense<0.000000e+00> : vector<8x128xf32>
    %38 = tpu.matmul %37, %35, %cst_18 {dimension_numbers = #tpu.dot_dimension_numbers<[1], [0], [0], [1], [0, 0, 1, 1], [], []>} : vector<8x128xbf16>, vector<128x128xbf16>, vector<8x128xf32> -> vector<8x128xf32>
    %39 = vector.broadcast %36 : vector<1x128xf32> to vector<8x128xf32>
    %40 = arith.addf %38, %39 : vector<8x128xf32>
    %c4 = arith.constant 4 : index
    %c0_19 = arith.constant 0 : index
    %41 = vector.load %arg2[%c4, %c0_19] : memref<16x128xf32, #tpu.memory_space<vmem>>, vector<1x128xf32>
    %c5 = arith.constant 5 : index
    %c0_20 = arith.constant 0 : index
    %42 = vector.load %arg2[%c5, %c0_20] : memref<16x128xf32, #tpu.memory_space<vmem>>, vector<1x128xf32>
    %cst_21 = arith.constant dense<0.000000e+00> : vector<8xf32>
    %43 = vector.multi_reduction <add>, %40, %cst_21 [1] : vector<8x128xf32> to vector<8xf32>
    %44 = vector.shape_cast %43 : vector<8xf32> to vector<8x1xf32>
    %45 = arith.mulf %40, %40 : vector<8x128xf32>
    %cst_22 = arith.constant dense<0.000000e+00> : vector<8xf32>
    %46 = vector.multi_reduction <add>, %45, %cst_22 [1] : vector<8x128xf32> to vector<8xf32>
    %47 = vector.shape_cast %46 : vector<8xf32> to vector<8x1xf32>
    %cst_23 = arith.constant 0.0416666679 : f32
    %48 = vector.broadcast %cst_23 : f32 to vector<8x1xf32>
    %49 = arith.mulf %44, %48 : vector<8x1xf32>
    %cst_24 = arith.constant 0.0416666679 : f32
    %50 = vector.broadcast %cst_24 : f32 to vector<8x1xf32>
    %51 = arith.mulf %47, %50 : vector<8x1xf32>
    %52 = arith.mulf %49, %49 : vector<8x1xf32>
    %53 = arith.subf %51, %52 : vector<8x1xf32>
    %54 = vector.broadcast %49 : vector<8x1xf32> to vector<8x128xf32>
    %55 = arith.subf %40, %54 : vector<8x128xf32>
    %cst_25 = arith.constant 9.99999974E-6 : f32
    %56 = vector.broadcast %cst_25 : f32 to vector<8x1xf32>
    %57 = arith.addf %53, %56 : vector<8x1xf32>
    %58 = math.rsqrt %57 : vector<8x1xf32>
    %59 = vector.broadcast %58 : vector<8x1xf32> to vector<8x128xf32>
    %60 = arith.mulf %55, %59 : vector<8x128xf32>
    %61 = vector.broadcast %41 : vector<1x128xf32> to vector<8x128xf32>
    %62 = arith.mulf %60, %61 : vector<8x128xf32>
    %63 = vector.broadcast %42 : vector<1x128xf32> to vector<8x128xf32>
    %64 = arith.addf %62, %63 : vector<8x128xf32>
    %cst_26 = arith.constant 0.000000e+00 : f32
    %65 = vector.broadcast %cst_26 : f32 to vector<8x128xf32>
    %66 = arith.maximumf %64, %65 : vector<8x128xf32>
    %c2_27 = arith.constant 2 : index
    %c0_28 = arith.constant 0 : index
    %c0_29 = arith.constant 0 : index
    %67 = vector.load %arg1[%c2_27, %c0_28, %c0_29] : memref<5x128x128xbf16, #tpu.memory_space<vmem>>, vector<1x128x128xbf16>
    %68 = vector.shape_cast %67 : vector<1x128x128xbf16> to vector<128x128xbf16>
    %c6 = arith.constant 6 : index
    %c0_30 = arith.constant 0 : index
    %69 = vector.load %arg2[%c6, %c0_30] : memref<16x128xf32, #tpu.memory_space<vmem>>, vector<1x128xf32>
    %70 = arith.truncf %66 : vector<8x128xf32> to vector<8x128xbf16>
    %cst_31 = arith.constant dense<0.000000e+00> : vector<8x128xf32>
    %71 = tpu.matmul %70, %68, %cst_31 {dimension_numbers = #tpu.dot_dimension_numbers<[1], [0], [0], [1], [0, 0, 1, 1], [], []>} : vector<8x128xbf16>, vector<128x128xbf16>, vector<8x128xf32> -> vector<8x128xf32>
    %72 = vector.broadcast %69 : vector<1x128xf32> to vector<8x128xf32>
    %73 = arith.addf %71, %72 : vector<8x128xf32>
    %c7 = arith.constant 7 : index
    %c0_32 = arith.constant 0 : index
    %74 = vector.load %arg2[%c7, %c0_32] : memref<16x128xf32, #tpu.memory_space<vmem>>, vector<1x128xf32>
    %c8 = arith.constant 8 : index
    %c0_33 = arith.constant 0 : index
    %75 = vector.load %arg2[%c8, %c0_33] : memref<16x128xf32, #tpu.memory_space<vmem>>, vector<1x128xf32>
    %cst_34 = arith.constant dense<0.000000e+00> : vector<8xf32>
    %76 = vector.multi_reduction <add>, %73, %cst_34 [1] : vector<8x128xf32> to vector<8xf32>
    %77 = vector.shape_cast %76 : vector<8xf32> to vector<8x1xf32>
    %78 = arith.mulf %73, %73 : vector<8x128xf32>
    %cst_35 = arith.constant dense<0.000000e+00> : vector<8xf32>
    %79 = vector.multi_reduction <add>, %78, %cst_35 [1] : vector<8x128xf32> to vector<8xf32>
    %80 = vector.shape_cast %79 : vector<8xf32> to vector<8x1xf32>
    %cst_36 = arith.constant 0.0416666679 : f32
    %81 = vector.broadcast %cst_36 : f32 to vector<8x1xf32>
    %82 = arith.mulf %77, %81 : vector<8x1xf32>
    %cst_37 = arith.constant 0.0416666679 : f32
    %83 = vector.broadcast %cst_37 : f32 to vector<8x1xf32>
    %84 = arith.mulf %80, %83 : vector<8x1xf32>
    %85 = arith.mulf %82, %82 : vector<8x1xf32>
    %86 = arith.subf %84, %85 : vector<8x1xf32>
    %87 = vector.broadcast %82 : vector<8x1xf32> to vector<8x128xf32>
    %88 = arith.subf %73, %87 : vector<8x128xf32>
    %cst_38 = arith.constant 9.99999974E-6 : f32
    %89 = vector.broadcast %cst_38 : f32 to vector<8x1xf32>
    %90 = arith.addf %86, %89 : vector<8x1xf32>
    %91 = math.rsqrt %90 : vector<8x1xf32>
    %92 = vector.broadcast %91 : vector<8x1xf32> to vector<8x128xf32>
    %93 = arith.mulf %88, %92 : vector<8x128xf32>
    %94 = vector.broadcast %74 : vector<1x128xf32> to vector<8x128xf32>
    %95 = arith.mulf %93, %94 : vector<8x128xf32>
    %96 = vector.broadcast %75 : vector<1x128xf32> to vector<8x128xf32>
    %97 = arith.addf %95, %96 : vector<8x128xf32>
    %cst_39 = arith.constant 0.000000e+00 : f32
    %98 = vector.broadcast %cst_39 : f32 to vector<8x128xf32>
    %99 = arith.maximumf %97, %98 : vector<8x128xf32>
    %c3_40 = arith.constant 3 : index
    %c0_41 = arith.constant 0 : index
    %c0_42 = arith.constant 0 : index
    %100 = vector.load %arg1[%c3_40, %c0_41, %c0_42] : memref<5x128x128xbf16, #tpu.memory_space<vmem>>, vector<1x128x128xbf16>
    %101 = vector.shape_cast %100 : vector<1x128x128xbf16> to vector<128x128xbf16>
    %c9 = arith.constant 9 : index
    %c0_43 = arith.constant 0 : index
    %102 = vector.load %arg2[%c9, %c0_43] : memref<16x128xf32, #tpu.memory_space<vmem>>, vector<1x128xf32>
    %103 = arith.truncf %99 : vector<8x128xf32> to vector<8x128xbf16>
    %cst_44 = arith.constant dense<0.000000e+00> : vector<8x128xf32>
    %104 = tpu.matmul %103, %101, %cst_44 {dimension_numbers = #tpu.dot_dimension_numbers<[1], [0], [0], [1], [0, 0, 1, 1], [], []>} : vector<8x128xbf16>, vector<128x128xbf16>, vector<8x128xf32> -> vector<8x128xf32>
    %105 = vector.broadcast %102 : vector<1x128xf32> to vector<8x128xf32>
    %106 = arith.addf %104, %105 : vector<8x128xf32>
    %c10 = arith.constant 10 : index
    %c0_45 = arith.constant 0 : index
    %107 = vector.load %arg2[%c10, %c0_45] : memref<16x128xf32, #tpu.memory_space<vmem>>, vector<1x128xf32>
    %c11 = arith.constant 11 : index
    %c0_46 = arith.constant 0 : index
    %108 = vector.load %arg2[%c11, %c0_46] : memref<16x128xf32, #tpu.memory_space<vmem>>, vector<1x128xf32>
    %cst_47 = arith.constant dense<0.000000e+00> : vector<8xf32>
    %109 = vector.multi_reduction <add>, %106, %cst_47 [1] : vector<8x128xf32> to vector<8xf32>
    %110 = vector.shape_cast %109 : vector<8xf32> to vector<8x1xf32>
    %111 = arith.mulf %106, %106 : vector<8x128xf32>
    %cst_48 = arith.constant dense<0.000000e+00> : vector<8xf32>
    %112 = vector.multi_reduction <add>, %111, %cst_48 [1] : vector<8x128xf32> to vector<8xf32>
    %113 = vector.shape_cast %112 : vector<8xf32> to vector<8x1xf32>
    %cst_49 = arith.constant 3.125000e-02 : f32
    %114 = vector.broadcast %cst_49 : f32 to vector<8x1xf32>
    %115 = arith.mulf %110, %114 : vector<8x1xf32>
    %cst_50 = arith.constant 3.125000e-02 : f32
    %116 = vector.broadcast %cst_50 : f32 to vector<8x1xf32>
    %117 = arith.mulf %113, %116 : vector<8x1xf32>
    %118 = arith.mulf %115, %115 : vector<8x1xf32>
    %119 = arith.subf %117, %118 : vector<8x1xf32>
    %120 = vector.broadcast %115 : vector<8x1xf32> to vector<8x128xf32>
    %121 = arith.subf %106, %120 : vector<8x128xf32>
    %cst_51 = arith.constant 9.99999974E-6 : f32
    %122 = vector.broadcast %cst_51 : f32 to vector<8x1xf32>
    %123 = arith.addf %119, %122 : vector<8x1xf32>
    %124 = math.rsqrt %123 : vector<8x1xf32>
    %125 = vector.broadcast %124 : vector<8x1xf32> to vector<8x128xf32>
    %126 = arith.mulf %121, %125 : vector<8x128xf32>
    %127 = vector.broadcast %107 : vector<1x128xf32> to vector<8x128xf32>
    %128 = arith.mulf %126, %127 : vector<8x128xf32>
    %129 = vector.broadcast %108 : vector<1x128xf32> to vector<8x128xf32>
    %130 = arith.addf %128, %129 : vector<8x128xf32>
    %cst_52 = arith.constant 0.000000e+00 : f32
    %131 = vector.broadcast %cst_52 : f32 to vector<8x128xf32>
    %132 = arith.maximumf %130, %131 : vector<8x128xf32>
    %c4_53 = arith.constant 4 : index
    %c0_54 = arith.constant 0 : index
    %c0_55 = arith.constant 0 : index
    %133 = vector.load %arg1[%c4_53, %c0_54, %c0_55] : memref<5x128x128xbf16, #tpu.memory_space<vmem>>, vector<1x128x128xbf16>
    %134 = vector.shape_cast %133 : vector<1x128x128xbf16> to vector<128x128xbf16>
    %c12 = arith.constant 12 : index
    %c0_56 = arith.constant 0 : index
    %135 = vector.load %arg2[%c12, %c0_56] : memref<16x128xf32, #tpu.memory_space<vmem>>, vector<1x128xf32>
    %136 = arith.truncf %132 : vector<8x128xf32> to vector<8x128xbf16>
    %cst_57 = arith.constant dense<0.000000e+00> : vector<8x128xf32>
    %137 = tpu.matmul %136, %134, %cst_57 {dimension_numbers = #tpu.dot_dimension_numbers<[1], [0], [0], [1], [0, 0, 1, 1], [], []>} : vector<8x128xbf16>, vector<128x128xbf16>, vector<8x128xf32> -> vector<8x128xf32>
    %138 = vector.broadcast %135 : vector<1x128xf32> to vector<8x128xf32>
    %139 = arith.addf %137, %138 : vector<8x128xf32>
    %c0_58 = arith.constant 0 : index
    %c0_59 = arith.constant 0 : index
    %140 = vector.load %arg3[%c0_58, %c0_59] : memref<8x128xf32, #tpu.memory_space<vmem>>, vector<8x128xf32>
    tpu.vector_store %arg3[%c0_58, %c0_59], %139 {strides = array<i32>} : memref<8x128xf32, #tpu.memory_space<vmem>>, vector<8x128xf32>,
    return
  }
}

</mosaic_0001>

<bundles_post_ra>
// kernel: _forward_impl.1
= control target key start
LH: loop header
LB: loop body
LE: loop exit
PB: predicated region body
PF: predicated region fallthrough
CT: control target
= control target key end

     0   :  { %8 = vsyncpa [#allocation3], 0  ;;  %s1147_s0 = inlined_call_operand.vmem [shape: f32[8,128], index: 0, kind: input, shape index: {}]   ;;  %s1148_s1 = inlined_call_operand.hbm [shape: bf16[5,128,128], index: 1, kind: input, shape index: {}]   ;;  %s1149_s2 = inlined_call_operand.vmem [shape: f32[16,128], index: 2, kind: input, shape index: {}]   ;;  %s1150_s3 = inlined_call_operand.hbm [shape: f32[8,128], index: 3, kind: output, shape index: {}]  }
   0x1   :  { %9 = vsyncpa [#allocation4], 0  ;;  %s1005_s12 = smov [#allocation2]   ;;  %s957_s16 = scalar_lea.hbm %s1148_s1, 5120 }
   0x2   :  { %s17_s13 = sshll.u32 %s1005_s12, 4  ;;  %p958_p0 = scmp.ne.s32.totalorder %s1148_s1, %s957_s16  ;;  %s18_s13 = int_to_ptr.vmem [resolvable:$true] %s17_s13 }
   0x3   :  { %p961_p1 = scmp.lt.u32.totalorder %s957_s16, %s1148_s1 }
   0x5   :  { %p963_p2 = pnand %p961_p1, %p958_p0 }
   0x7   :  { %966 = shalt.err (!%p963_p2)
}
   0x8   :  { %s967_s21 = scalar_lea.vmem %s18_s13, 5120  ;;  %p972_p4 = scmp.lt.s32.totalorder %s18_s13, %s18_s13 }
   0x9   :  { %p968_p3 = scmp.ne.s32.totalorder %s18_s13, %s967_s21  ;;  %p973_p5 = scmp.lt.s32.totalorder %s967_s21, %s967_s21 }
   0xb   :  { %p974_p6 = por %p973_p5, %p972_p4 }
   0xd   :  { %p975_p7 = pnand %p974_p6, %p968_p3 }
   0xf   :  { %978 = shalt.err (!%p975_p7)
}
  0x10   :  { %s1006_s22 = smov 64   ;;  %s1007_s23 = smov 4  }
  0x11   :  { %23 = dma.hbm_to_vmem [thread:$0]  %s1148_s1, 5120, %s18_s13, [#allocation3], %s1006_s22, %s1006_s22, %s1007_s23  }
  0x12   :  { %1001 = dma.done.wait [#allocation3], 5120  }
  0x13   :  { %1002 = vsyncadd [#allocation3], 4294962176  ;;  %v1008_v0 = vmov 0.0   ;;  %vm1009_vm0 = vmmov 0   ;;  %v909_v1 = vld [vmem:[#allocation2] sm:$0xff]   ;;  %v910_v2 = vld [vmem:[#allocation2 + $0x8] sm:$0xff]  }
  0x14   :  { %803 = vmatprep.subr.bf16.mxu0 %v1008_v0  ;;  %819 = vmatprep.mubr.msk.bf16.mxu0 %vm1009_vm0, %v1008_v0  ;;  %v911_v3 = vld [vmem:[#allocation2 + $0x10] sm:$0xff]   ;;  %v912_v4 = vld [vmem:[#allocation2 + $0x18] sm:$0xff]   ;;  %v913_v5 = vld [vmem:[#allocation2 + $0x20] sm:$0xff]   ;;  %s1010_s25 = smov [#allocation5]  }
  0x15   :  { %823 = vmatprep.subr.bf16.mxu1 %v1008_v0  ;;  %839 = vmatprep.mubr.msk.bf16.mxu1 %vm1009_vm0, %v1008_v0  ;;  %v914_v6 = vld [vmem:[#allocation2 + $0x28] sm:$0xff]   ;;  %v915_v7 = vld [vmem:[#allocation2 + $0x30] sm:$0xff]   ;;  %v916_v8 = vld [vmem:[#allocation2 + $0x38] sm:$0xff]   ;;  %s696_s1 = sshll.u32 %s1010_s25, 4  ;;  %s697_s1 = int_to_ptr.vmem [resolvable:$true] %s696_s1 }
  0x16   :  { %804 = vmatpush3.bf16.msra.mxu0 %v909_v1  ;;  %v30_v9 = vld [vmem:[%s1147_s0] sm:$0xff]  ;;  %v918_v19 = vld [vmem:[#allocation2 + $0x48] sm:$0xff]   ;;  %v919_v20 = vld [vmem:[#allocation2 + $0x50] sm:$0xff]   ;;  %s979_s26 = scalar_lea.vmem %s697_s1, 128  ;;  %p984_p9 = scmp.lt.s32.totalorder %s697_s1, %s697_s1 }
  0x17   :  { %805 = vmatprep.subr.bf16.mxu0 %v1008_v0  ;;  %v48_v10 = vpack.c.bf16 %v30_v9, %v30_v9  ;;  %v705_v11 = vld [vmem:[%s1149_s2] ss:$0 sm:$0xff]  ;;  %v920_v21 = vld [vmem:[#allocation2 + $0x58] sm:$0xff]   ;;  %v922_v23 = vld [vmem:[#allocation2 + $0x68] sm:$0xff]   ;;  %p980_p8 = scmp.ne.s32.totalorder %s697_s1, %s979_s26  ;;  %p985_p10 = scmp.lt.s32.totalorder %s979_s26, %s979_s26 }
  0x18   :  { %v917_v18 = vld [vmem:[#allocation2 + $0x40] sm:$0xff]   ;;  %v923_v24 = vld [vmem:[#allocation2 + $0x70] sm:$0xff]   ;;  %v924_v25 = vld [vmem:[#allocation2 + $0x78] sm:$0xff]  }
  0x19   :  { %824 = vmatpush3.bf16.msra.mxu1 %v917_v18  ;;  %v921_v22 = vld [vmem:[#allocation2 + $0x60] sm:$0xff]   ;;  %v926_v50 = vld [vmem:[#allocation2 + $0x88] sm:$0xff]   ;;  %v927_v51 = vld [vmem:[#allocation2 + $0x90] sm:$0xff]   ;;  %p986_p11 = por %p985_p10, %p984_p9 }
  0x1a   :  { %806 = vmatpush3.bf16.msra.mxu0 %v910_v2  ;;  %825 = vmatprep.subr.bf16.mxu1 %v1008_v0  ;;  %v714_v35 = vld [vmem:[%s1149_s2 + $0x1] ss:$0 sm:$0xff]  ;;  %v715_v37 = vld [vmem:[%s1149_s2 + $0x2] ss:$0 sm:$0xff]  ;;  %v716_v42 = vld [vmem:[%s1149_s2 + $0x3] ss:$0 sm:$0xff] }
  0x1b   :  { %807 = vmatprep.subr.bf16.mxu0 %v1008_v0  ;;  %v925_v49 = vld [vmem:[#allocation2 + $0x80] sm:$0xff]   ;;  %v928_v52 = vld [vmem:[#allocation2 + $0x98] sm:$0xff]   ;;  %v930_v54 = vld [vmem:[#allocation2 + $0xa8] sm:$0xff]   ;;  %p987_p12 = pnand %p986_p11, %p980_p8 }
  0x1c   :  { %v929_v53 = vld [vmem:[#allocation2 + $0xa0] sm:$0xff]   ;;  %v931_v55 = vld [vmem:[#allocation2 + $0xb0] sm:$0xff]   ;;  %v932_v56 = vld [vmem:[#allocation2 + $0xb8] sm:$0xff]  }
  0x1d   :  { %826 = vmatpush3.bf16.msra.mxu1 %v918_v19  ;;  %v934_v18 = vld [vmem:[#allocation2 + $0xc8] sm:$0xff]   ;;  %v935_v19 = vld [vmem:[#allocation2 + $0xd0] sm:$0xff]  }
  0x1e   :  { %808 = vmatpush3.bf16.msra.mxu0 %v911_v3  ;;  %827 = vmatprep.subr.bf16.mxu1 %v1008_v0  ;;  %v725_v3 = vld [vmem:[%s1149_s2 + $0x4] ss:$0 sm:$0xff] }
  0x1f   :  { %809 = vmatprep.subr.bf16.mxu0 %v1008_v0 }
  0x21   :  { %828 = vmatpush3.bf16.msra.mxu1 %v919_v20  ;;  %v936_v20 = vld [vmem:[#allocation2 + $0xd8] sm:$0xff]  }
  0x22   :  { %810 = vmatpush3.bf16.msra.mxu0 %v912_v4  ;;  %829 = vmatprep.subr.bf16.mxu1 %v1008_v0 }
  0x23   :  { %811 = vmatprep.subr.bf16.mxu0 %v1008_v0 }
  0x25   :  { %830 = vmatpush3.bf16.msra.mxu1 %v920_v21  ;;  %v937_v21 = vld [vmem:[#allocation2 + $0xe0] sm:$0xff]  }
  0x26   :  { %812 = vmatpush3.bf16.msra.mxu0 %v913_v5  ;;  %831 = vmatprep.subr.bf16.mxu1 %v1008_v0  ;;  %v726_v5 = vld [vmem:[%s1149_s2 + $0x5] ss:$0 sm:$0xff] }
  0x27   :  { %813 = vmatprep.subr.bf16.mxu0 %v1008_v0 }
  0x29   :  { %832 = vmatpush3.bf16.msra.mxu1 %v921_v22  ;;  %v938_v22 = vld [vmem:[#allocation2 + $0xe8] sm:$0xff]  }
  0x2a   :  { %814 = vmatpush3.bf16.msra.mxu0 %v914_v6  ;;  %833 = vmatprep.subr.bf16.mxu1 %v1008_v0 }
  0x2b   :  { %815 = vmatprep.subr.bf16.mxu0 %v1008_v0 }
  0x2d   :  { %834 = vmatpush3.bf16.msra.mxu1 %v922_v23  ;;  %v939_v23 = vld [vmem:[#allocation2 + $0xf0] sm:$0xff]  }
  0x2e   :  { %816 = vmatpush3.bf16.msra.mxu0 %v915_v7  ;;  %835 = vmatprep.subr.bf16.mxu1 %v1008_v0 }
  0x2f   :  { %817 = vmatprep.subr.bf16.mxu0 %v1008_v0 }
  0x31   :  { %836 = vmatpush3.bf16.msra.mxu1 %v923_v24  ;;  %v940_v24 = vld [vmem:[#allocation2 + $0xf8] sm:$0xff]  }
  0x32   :  { %818 = vmatpush3.bf16.msra.mxu0 %v916_v8  ;;  %837 = vmatprep.subr.bf16.mxu1 %v1008_v0 }
  0x33   :  { %843 = vmatprep.subr.bf16.mxu0 %v1008_v0 }
  0x35   :  { %820 = vmatmul.mubr.bf16.vlgmr.msra.gmra.mrb[0].mxu0 %v48_v10  ;;  %838 = vmatpush3.bf16.msra.mxu1 %v924_v25  ;;  %v933_v10 = vld [vmem:[#allocation2 + $0xc0] sm:$0xff]  }
  0x36   :  { %859 = vmatprep.mubr.msk.bf16.mxu0 %vm1009_vm0, %v1008_v0  ;;  %863 = vmatprep.subr.bf16.mxu1 %v1008_v0 }
  0x37   :  { %844 = vmatpush3.bf16.msra.mxu0 %v925_v49  ;;  %v942_v49 = vld [vmem:[#allocation2 + $0x108] sm:$0xff]  }
  0x38   :  { %845 = vmatprep.subr.bf16.mxu0 %v1008_v0 }
  0x3b   :  { %846 = vmatpush3.bf16.msra.mxu0 %v926_v50  ;;  %v943_v50 = vld [vmem:[#allocation2 + $0x110] sm:$0xff]  }
  0x3c   :  { %847 = vmatprep.subr.bf16.mxu0 %v1008_v0 }
  0x3f   :  { %848 = vmatpush3.bf16.msra.mxu0 %v927_v51  ;;  %v944_v51 = vld [vmem:[#allocation2 + $0x118] sm:$0xff]  }
  0x40   :  { %849 = vmatprep.subr.bf16.mxu0 %v1008_v0 }
  0x43   :  { %850 = vmatpush3.bf16.msra.mxu0 %v928_v52  ;;  %v945_v52 = vld [vmem:[#allocation2 + $0x120] sm:$0xff]  }
  0x44   :  { %851 = vmatprep.subr.bf16.mxu0 %v1008_v0 }
  0x47   :  { %852 = vmatpush3.bf16.msra.mxu0 %v929_v53  ;;  %v946_v53 = vld [vmem:[#allocation2 + $0x128] sm:$0xff]  }
  0x48   :  { %853 = vmatprep.subr.bf16.mxu0 %v1008_v0 }
  0x4b   :  { %854 = vmatpush3.bf16.msra.mxu0 %v930_v54  ;;  %v947_v54 = vld [vmem:[#allocation2 + $0x130] sm:$0xff]  }
  0x4c   :  { %855 = vmatprep.subr.bf16.mxu0 %v1008_v0 }
  0x4f   :  { %856 = vmatpush3.bf16.msra.mxu0 %v931_v55  ;;  %v948_v55 = vld [vmem:[#allocation2 + $0x138] sm:$0xff]  }
  0x50   :  { %857 = vmatprep.subr.bf16.mxu0 %v1008_v0 }
  0x53   :  { %858 = vmatpush3.bf16.msra.mxu0 %v932_v56 }
  0x54   :  { %883 = vmatprep.subr.bf16.mxu0 %v1008_v0 }
 0x108   :  { %v135_v12 = vpop.f32.mrb[0].mxu0 }
 0x109   :  { %v136_v13 = vadd.f32 %v705_v11, %v135_v12  ;;  %v821_v14 = vpop.f32.mrb[1].mxu0  ;;  %v727_v11 = vld [vmem:[%s1149_s2 + $0x6] ss:$0 sm:$0xff] }
 0x10a   :  { %v138_v15 = vpop.f32.mrb[2].mxu0 }
 0x10b   :  { %143 = vadd.xlane.f32.xlu0 %v136_v13  ;;  %v822_v16 = vpop.f32.mrb[3].mxu0  ;;  %v145_v17 = vmul.f32 %v136_v13, %v136_v13 }
 0x10f   :  { %146 = vadd.xlane.f32.xlu0 %v145_v17 }
 0x198   :  { %v144_v26 = vpop.xlane.xlu0 %143 }
 0x199   :  { %v148_v27 = vmul.f32 0.03125, %v144_v26 }
 0x19b   :  { %v150_v29 = vmul.f32 %v148_v27, %v148_v27  ;;  %v152_v33 = vsub.f32 %v136_v13, %v148_v27 }
 0x19c   :  { %v147_v28 = vpop.xlane.xlu0 %146 }
 0x19d   :  { %v149_v30 = vmul.f32 0.03125, %v147_v28 }
 0x19f   :  { %v151_v31 = vsub.f32 %v149_v30, %v150_v29 }
 0x1a1   :  { %v153_v32 = vadd.f32 1e-05, %v151_v31 }
 0x1a3   :  { %949 = vrsqrt.f32 %v153_v32 }
 0x1ad   :  { %v950_v34 = vpop.eup %949 }
 0x1ae   :  { %v155_v36 = vmul.f32 %v950_v34, %v152_v33  ;;  %v736_v34 = vld [vmem:[%s1149_s2 + $0x7] ss:$0 sm:$0xff] }
 0x1b0   :  { %v160_v38 = vmul.f32 %v714_v35, %v155_v36  ;;  %v737_v36 = vld [vmem:[%s1149_s2 + $0x8] ss:$0 sm:$0xff] }
 0x1b2   :  { %v165_v39 = vadd.f32 %v715_v37, %v160_v38 }
 0x1b4   :  { %v166_v40 = vmax.f32 %v165_v39, 0.0 }
 0x1b6   :  { %v185_v41 = vpack.c.bf16 %v166_v40, %v166_v40 }
 0x1b8   :  { %840 = vmatmul.mubr.bf16.vlgmr.msra.gmra.mrb[0].mxu1 %v185_v41  ;;  %v941_v41 = vld [vmem:[#allocation2 + $0x100] sm:$0xff]  }
 0x1b9   :  { %879 = vmatprep.mubr.msk.bf16.mxu1 %vm1009_vm0, %v1008_v0  ;;  %864 = vmatpush3.bf16.msra.mxu1 %v933_v10 }
 0x1ba   :  { %865 = vmatprep.subr.bf16.mxu1 %v1008_v0 }
 0x1bd   :  { %866 = vmatpush3.bf16.msra.mxu1 %v934_v18 }
 0x1be   :  { %867 = vmatprep.subr.bf16.mxu1 %v1008_v0 }
 0x1c1   :  { %868 = vmatpush3.bf16.msra.mxu1 %v935_v19 }
 0x1c2   :  { %869 = vmatprep.subr.bf16.mxu1 %v1008_v0 }
 0x1c5   :  { %870 = vmatpush3.bf16.msra.mxu1 %v936_v20 }
 0x1c6   :  { %871 = vmatprep.subr.bf16.mxu1 %v1008_v0 }
 0x1c9   :  { %872 = vmatpush3.bf16.msra.mxu1 %v937_v21 }
 0x1ca   :  { %873 = vmatprep.subr.bf16.mxu1 %v1008_v0 }
 0x1cd   :  { %874 = vmatpush3.bf16.msra.mxu1 %v938_v22 }
 0x1ce   :  { %875 = vmatprep.subr.bf16.mxu1 %v1008_v0 }
 0x1d1   :  { %876 = vmatpush3.bf16.msra.mxu1 %v939_v23 }
 0x1d2   :  { %877 = vmatprep.subr.bf16.mxu1 %v1008_v0 }
 0x1d5   :  { %878 = vmatpush3.bf16.msra.mxu1 %v940_v24 }
 0x28b   :  { %v272_v43 = vpop.f32.mrb[0].mxu1 }
 0x28c   :  { %v273_v44 = vadd.f32 %v716_v42, %v272_v43  ;;  %v841_v45 = vpop.f32.mrb[1].mxu1  ;;  %v738_v42 = vld [vmem:[%s1149_s2 + $0x9] ss:$0 sm:$0xff] }
 0x28d   :  { %v275_v46 = vpop.f32.mrb[2].mxu1 }
 0x28e   :  { %280 = vadd.xlane.f32.xlu1 %v273_v44  ;;  %v842_v47 = vpop.f32.mrb[3].mxu1  ;;  %v282_v48 = vmul.f32 %v273_v44, %v273_v44 }
 0x292   :  { %283 = vadd.xlane.f32.xlu1 %v282_v48 }
 0x31b   :  { %v281_v57 = vpop.xlane.xlu1 %280 }
 0x31c   :  { %v285_v58 = vmul.f32 0.041666668, %v281_v57 }
 0x31e   :  { %v287_v60 = vmul.f32 %v285_v58, %v285_v58  ;;  %v289_v1 = vsub.f32 %v273_v44, %v285_v58 }
 0x31f   :  { %v284_v59 = vpop.xlane.xlu1 %283 }
 0x320   :  { %v286_v61 = vmul.f32 0.041666668, %v284_v59 }
 0x322   :  { %v288_v62 = vsub.f32 %v286_v61, %v287_v60 }
 0x324   :  { %v290_v63 = vadd.f32 1e-05, %v288_v62 }
 0x326   :  { %951 = vrsqrt.f32 %v290_v63 }
 0x330   :  { %v952_v2 = vpop.eup %951 }
 0x331   :  { %v292_v4 = vmul.f32 %v952_v2, %v289_v1  ;;  %v747_v2 = vld [vmem:[%s1149_s2 + $0xa] ss:$0 sm:$0xff] }
 0x333   :  { %v297_v6 = vmul.f32 %v725_v3, %v292_v4 }
 0x335   :  { %v302_v7 = vadd.f32 %v726_v5, %v297_v6 }
 0x337   :  { %v303_v8 = vmax.f32 %v302_v7, 0.0 }
 0x339   :  { %v322_v9 = vpack.c.bf16 %v303_v8, %v303_v8  ;;  %v749_v8 = vld [vmem:[%s1149_s2 + $0xc] ss:$0 sm:$0xff] }
 0x33b   :  { %860 = vmatmul.mubr.bf16.vlgmr.msra.gmra.mrb[4].mxu0 %v322_v9 }
 0x33c   :  { %899 = vmatprep.mubr.msk.bf16.mxu0 %vm1009_vm0, %v1008_v0  ;;  %884 = vmatpush3.bf16.msra.mxu0 %v941_v41 }
 0x33d   :  { %885 = vmatprep.subr.bf16.mxu0 %v1008_v0 }
 0x340   :  { %886 = vmatpush3.bf16.msra.mxu0 %v942_v49 }
 0x341   :  { %887 = vmatprep.subr.bf16.mxu0 %v1008_v0 }
 0x344   :  { %888 = vmatpush3.bf16.msra.mxu0 %v943_v50 }
 0x345   :  { %889 = vmatprep.subr.bf16.mxu0 %v1008_v0 }
 0x348   :  { %890 = vmatpush3.bf16.msra.mxu0 %v944_v51 }
 0x349   :  { %891 = vmatprep.subr.bf16.mxu0 %v1008_v0 }
 0x34c   :  { %892 = vmatpush3.bf16.msra.mxu0 %v945_v52 }
 0x34d   :  { %893 = vmatprep.subr.bf16.mxu0 %v1008_v0 }
 0x350   :  { %894 = vmatpush3.bf16.msra.mxu0 %v946_v53 }
 0x351   :  { %895 = vmatprep.subr.bf16.mxu0 %v1008_v0 }
 0x354   :  { %896 = vmatpush3.bf16.msra.mxu0 %v947_v54 }
 0x355   :  { %897 = vmatprep.subr.bf16.mxu0 %v1008_v0  ;;  %v748_v0 = vld [vmem:[%s1149_s2 + $0xb] ss:$0 sm:$0xff] }
 0x358   :  { %898 = vmatpush3.bf16.msra.mxu0 %v948_v55 }
 0x40e   :  { %v409_v12 = vpop.f32.mrb[4].mxu0 }
 0x40f   :  { %v410_v13 = vadd.f32 %v727_v11, %v409_v12  ;;  %v861_v14 = vpop.f32.mrb[5].mxu0 }
 0x410   :  { %v412_v15 = vpop.f32.mrb[6].mxu0 }
 0x411   :  { %417 = vadd.xlane.f32.xlu0 %v410_v13  ;;  %v862_v16 = vpop.f32.mrb[7].mxu0  ;;  %v419_v17 = vmul.f32 %v410_v13, %v410_v13 }
 0x413   :  { %420 = vadd.xlane.f32.xlu1 %v419_v17 }
 0x49e   :  { %v418_v25 = vpop.xlane.xlu0 %417 }
 0x49f   :  { %v422_v26 = vmul.f32 0.041666668, %v418_v25 }
 0x4a0   :  { %v421_v27 = vpop.xlane.xlu1 %420 }
 0x4a1   :  { %v424_v28 = vmul.f32 %v422_v26, %v422_v26  ;;  %v423_v29 = vmul.f32 0.041666668, %v421_v27  ;;  %v426_v32 = vsub.f32 %v410_v13, %v422_v26 }
 0x4a3   :  { %v425_v30 = vsub.f32 %v423_v29, %v424_v28 }
 0x4a5   :  { %v427_v31 = vadd.f32 1e-05, %v425_v30 }
 0x4a7   :  { %953 = vrsqrt.f32 %v427_v31 }
 0x4b1   :  { %v954_v33 = vpop.eup %953 }
 0x4b2   :  { %v429_v35 = vmul.f32 %v954_v33, %v426_v32 }
 0x4b4   :  { %v434_v37 = vmul.f32 %v736_v34, %v429_v35 }
 0x4b6   :  { %v439_v38 = vadd.f32 %v737_v36, %v434_v37 }
 0x4b8   :  { %v440_v39 = vmax.f32 %v439_v38, 0.0 }
 0x4ba   :  { %v459_v40 = vpack.c.bf16 %v440_v39, %v440_v39 }
 0x4bc   :  { %880 = vmatmul.mubr.bf16.vlgmr.msra.gmra.mrb[4].mxu1 %v459_v40 }
 0x58f   :  { %v546_v43 = vpop.f32.mrb[4].mxu1 }
 0x590   :  { %v547_v44 = vadd.f32 %v738_v42, %v546_v43  ;;  %v881_v45 = vpop.f32.mrb[5].mxu1 }
 0x591   :  { %v549_v46 = vpop.f32.mrb[6].mxu1 }
 0x592   :  { %554 = vadd.xlane.f32.xlu0 %v547_v44  ;;  %v882_v47 = vpop.f32.mrb[7].mxu1  ;;  %v556_v48 = vmul.f32 %v547_v44, %v547_v44 }
 0x594   :  { %557 = vadd.xlane.f32.xlu1 %v556_v48 }
 0x61f   :  { %v555_v56 = vpop.xlane.xlu0 %554 }
 0x620   :  { %v559_v57 = vmul.f32 0.03125, %v555_v56 }
 0x621   :  { %v558_v58 = vpop.xlane.xlu1 %557 }
 0x622   :  { %v561_v59 = vmul.f32 %v559_v57, %v559_v57  ;;  %v560_v60 = vmul.f32 0.03125, %v558_v58  ;;  %v563_v63 = vsub.f32 %v547_v44, %v559_v57 }
 0x624   :  { %v562_v61 = vsub.f32 %v560_v60, %v561_v59 }
 0x626   :  { %v564_v62 = vadd.f32 1e-05, %v562_v61 }
 0x628   :  { %955 = vrsqrt.f32 %v564_v62 }
 0x632   :  { %v956_v1 = vpop.eup %955 }
 0x633   :  { %v566_v3 = vmul.f32 %v956_v1, %v563_v63 }
 0x635   :  { %v571_v4 = vmul.f32 %v747_v2, %v566_v3 }
 0x637   :  { %v576_v5 = vadd.f32 %v748_v0, %v571_v4 }
 0x639   :  { %v577_v6 = vmax.f32 %v576_v5, 0.0 }
 0x63b   :  { %v596_v7 = vpack.c.bf16 %v577_v6, %v577_v6 }
 0x63d   :  { %900 = vmatmul.mubr.bf16.vlgmr.msra.gmra.mrb[8].mxu0 %v596_v7 }
 0x710   :  { %v683_v9 = vpop.f32.mrb[8].mxu0 }
 0x711   :  { %v684_v10 = vadd.f32 %v749_v8, %v683_v9  ;;  %v901_v11 = vpop.f32.mrb[9].mxu0 }
 0x712   :  { %v686_v12 = vpop.f32.mrb[10].mxu0 }
 0x713   :  { %689 = vst [vmem:[#allocation5] sm:$0xff] %v684_v10  ;;  %v902_v13 = vpop.f32.mrb[11].mxu0 }
 0x714   :  { %990 = shalt.err (!%p987_p12)
}
 0x715   :  { %s991_s2 = scalar_lea.hbm %s1150_s3, 128 }
 0x716   :  { %p992_p13 = scmp.ne.s32.totalorder %s1150_s3, %s991_s2  ;;  %p995_p0 = scmp.lt.u32.totalorder %s991_s2, %s1150_s3 }
 0x718   :  { %p997_p1 = pnand %p995_p0, %p992_p13 }
 0x71a   :  { %1000 = shalt.err (!%p997_p1)
}
 0x71b   :  { %699 = dma.vmem_to_hbm [thread:$0]  %s697_s1, 128, %s1150_s3, [#allocation4]  }
 0x71c   :  { %1003 = dma.done.wait [#allocation4], 128  }
 0x71d   :  { %1004 = vsyncadd [#allocation4], 4294967168 }
 0x71e   :  { %703 = vsyncpa [#allocation3], 1 }
 0x71f   :  { %704 = vsyncpa [#allocation4], 1 }

</bundles_post_ra>
